<compile_context>
chip_gen: v7x
topology: tpu7x:2x2x1
jax: 0.10.0
libtpu: 0.0.40
codegen_flags: <defaults>
</compile_context>

<pallas_src>
import jax
import jax.numpy as jnp
from jax.experimental import pallas as pl
from jax.experimental.pallas import tpu as pltpu

MIB = 1024 * 1024


def _round_up(x, m):
    return ((x + m - 1) // m) * m


def _vmem_budget():
    """Per-core VMEM budget: capacity minus headroom for Mosaic internal scratch."""
    try:
        cap = int(pltpu.get_tpu_info().vmem_capacity_bytes)
    except Exception:                       # non-TPU trace / API drift -> assume 128 MiB part
        cap = 128 * MIB
    headroom = 8 * MIB if cap <= 64 * MIB else 16 * MIB
    return max(cap - headroom, 24 * MIB)


def _vmem_footprint(tm, th, d, x_itemsize=4):
    """Estimated VMEM bytes per grid step: double-buffered input/weight blocks,
    f32 output block, plus in-kernel intermediates (uv, g, h, bf16 casts)."""
    blocks = 2 * (tm * d * x_itemsize       # x row tile (f32, cast inside kernel)
                  + d * 2 * th * 2          # fused [w1 | w3] bf16 tile
                  + th * d * 2)             # w2 bf16 tile
    blocks += 2 * tm * d * 4                # f32 output / accumulator block
    inter = (tm * d * 2                     # bf16 cast of x tile
             + tm * 2 * th * 4              # uv f32
             + 2 * tm * th * 4              # g, h f32
             + tm * th * 2)                 # bf16 cast of h
    return blocks + inter


def _choose_hidden_tile(d, h, budget, force_th=None):
    """Pick hidden tile th (128-aligned or == H) and padded hidden dim."""
    if force_th is not None:
        return force_th, _round_up(h, force_th)
    # Single hidden step when the fused bf16 weights fit in ~1/3 of the budget:
    # weight blocks then have a constant index_map and are DMA'd exactly once.
    if 3 * d * h * 2 <= budget // 3:
        return h, h
    # Otherwise stream the hidden dim with lane-aligned tiles (th % 128 == 0):
    # 256 on 64 MiB parts (v7x), 512 on 128 MiB parts (v5e/v6e).
    max_th = 256 if budget <= 72 * MIB else 512
    th = min(max_th, max(128, (h // 128) * 128))
    th = max(128, (th // 128) * 128)
    return th, _round_up(h, th)


def _choose_row_tile(m, d, th, budget, x_itemsize=4):
    """Row tile: big enough to cover weight re-streaming with MXU compute,
    shrunk until the footprint fits the per-generation VMEM budget."""
    m8 = _round_up(max(m, 1), 8)
    if budget >= 96 * MIB:
        target = 1024          # 128 MiB parts (v5e / v6e)
    elif budget >= 48 * MIB:
        target = 512           # 64 MiB parts (v7x)
    else:
        target = 256
    tm = min(_round_up(target, 8), m8)
    while tm > 8 and _vmem_footprint(tm, th, d, x_itemsize) > budget:
        tm = _round_up(max(tm // 2, 8), 8)
    return max(tm, 8)


def swiglu_kernel(x_ref, w13_ref, w2_ref, o_ref):
    # x_ref:   (TM, D)    f32 row tile (resident over the hidden axis j)
    # w13_ref: (D, 2*TH)  bf16 fused [w1 tile j | w3 tile j]
    # w2_ref:  (TH, D)    bf16 output-projection tile j
    # o_ref:   (TM, D)    f32 output block; index_map ignores j, so it stays
    #                     resident in VMEM and doubles as the accumulator.
    j = pl.program_id(1)
    th = w2_ref.shape[0]

    xb = x_ref[...].astype(w13_ref.dtype)                    # f32 -> bf16, in VMEM
    uv = jnp.dot(xb, w13_ref[...],
                 preferred_element_type=jnp.float32)         # one MXU pass: (TM, 2*TH)
    u = uv[:, :th]
    v = uv[:, th:]
    g = u * jax.nn.sigmoid(u)                                # SiLU in f32 (EUP)
    y = jnp.dot((g * v).astype(w2_ref.dtype), w2_ref[...],
                preferred_element_type=jnp.float32)          # (TM, D) f32

    @pl.when(j == 0)
    def _():
        o_ref[...] = y

    @pl.when(j > 0)
    def _():
        o_ref[...] += y
    # TODO(synk): nn.Dropout is a no-op in eval mode; training-mode dropout
    # (pltpu.prng_seed + pltpu.prng_random_bits masking) intentionally omitted.


def prepare_swiglu_params(w1, w3, w2, *, compute_dtype=jnp.bfloat16, force_th=None):
    """One-time weight prep: pad H to a tile multiple, fuse w1|w3, cast to bf16."""
    d, h = w1.shape
    assert w3.shape == (d, h) and w2.shape == (h, d)
    budget = _vmem_budget()
    th, h_pad = _choose_hidden_tile(d, h, budget, force_th=force_th)
    if h_pad != h:
        # Zero pad: padded hidden units contribute exactly 0 to the output.
        w1 = jnp.pad(w1, ((0, 0), (0, h_pad - h)))
        w3 = jnp.pad(w3, ((0, 0), (0, h_pad - h)))
        w2 = jnp.pad(w2, ((0, h_pad - h), (0, 0)))
    n_h = h_pad // th
    w1b = w1.astype(compute_dtype).reshape(d, n_h, th)
    w3b = w3.astype(compute_dtype).reshape(d, n_h, th)
    w13 = jnp.concatenate([w1b, w3b], axis=-1).reshape(d, 2 * h_pad)
    w2b = w2.astype(compute_dtype)
    return dict(w13=w13, w2=w2b, D=d, H=h, H_pad=h_pad, th=th, budget=budget)


def mlp_swiglu(x, params):
    """SwiGLU MLP forward.  x: [B, T, D] -> [B, T, D] (same dtype as x)."""
    b, t, d = x.shape
    assert d == params["D"], "embedding dim mismatch with prepared weights"
    w13, w2b = params["w13"], params["w2"]
    h_pad, th, budget = params["H_pad"], params["th"], params["budget"]
    n_h = h_pad // th

    m = b * t
    tm = _choose_row_tile(m, d, th, budget)
    m_pad = _round_up(m, tm)

    x2 = x.reshape(m, d)
    if x2.dtype != jnp.float32:
        x2 = x2.astype(jnp.float32)
    if m_pad != m:
        x2 = jnp.pad(x2, ((0, m_pad - m), (0, 0)))   # zero rows; discarded below

    n_row = m_pad // tm
    cost = pl.CostEstimate(
        flops=6 * m_pad * d * h_pad,                 # 2*M*D*(2H) + 2*M*H*D
        transcendentals=m_pad * h_pad,               # sigmoid in SiLU
        bytes_accessed=(x2.size * 4                  # activations in (f32)
                        + n_row * (w13.size + w2b.size) * 2  # weights re-streamed per row tile
                        + m_pad * d * 4),            # output (f32)
    )
    footprint = _vmem_footprint(tm, th, d)
    vmem_limit = int(min(budget, max(32 * MIB, footprint * 5 // 4)))

    out = pl.pallas_call(
        swiglu_kernel,
        out_shape=jax.ShapeDtypeStruct((m_pad, d), jnp.float32),
        grid_spec=pltpu.PrefetchScalarGridSpec(
            num_scalar_prefetch=0,
            grid=(n_row, n_h),
            in_specs=[
                pl.BlockSpec((tm, d), lambda i, j: (i, 0)),       # x rows (resident over j)
                pl.BlockSpec((d, 2 * th), lambda i, j: (0, j)),   # fused w1|w3 tile j
                pl.BlockSpec((th, d), lambda i, j: (j, 0)),       # w2 tile j
            ],
            out_specs=pl.BlockSpec((tm, d), lambda i, j: (i, 0)),
        ),
        compiler_params=pltpu.CompilerParams(
            dimension_semantics=("parallel", "arbitrary"),
            vmem_limit_bytes=vmem_limit,
        ),
        cost_estimate=cost,
    )(x2, w13, w2b)

    return out[:m].reshape(b, t, d).astype(x.dtype)


def mlp_swiglu_ref_f32(x, w1, w3, w2):
    u = x @ w1
    v = x @ w3
    return (jax.nn.silu(u) * v) @ w2


def mlp_swiglu_ref_bf16(x, w1, w3, w2):
    cd = jnp.bfloat16
    xb = x.astype(cd)
    u = jnp.dot(xb, w1.astype(cd), preferred_element_type=jnp.float32)
    v = jnp.dot(xb, w3.astype(cd), preferred_element_type=jnp.float32)
    h = (u * jax.nn.sigmoid(u)) * v
    return jnp.dot(h.astype(cd), w2.astype(cd),
                   preferred_element_type=jnp.float32).astype(x.dtype)


if __name__ == "__main__":
    # configs: n_embd=32, scale=4 -> h_dim=128, bias=False, dropout=0 (eval mode).
    B, T, D = 2, 8, 32
    H = 4 * D

    key = jax.random.PRNGKey(0)
    kx, k1, k2, k3 = jax.random.split(key, 4)
    x = jax.random.normal(kx, (B, T, D), dtype=jnp.float32)
    w1 = jax.random.normal(k1, (D, H), dtype=jnp.float32) * (1.0 / D**0.5)
    w3 = jax.random.normal(k3, (D, H), dtype=jnp.float32) * (1.0 / D**0.5)
    w2 = jax.random.normal(k2, (H, D), dtype=jnp.float32) * (1.0 / H**0.5)

    # Weight prep happens once (not in the per-forward path).
    params = prepare_swiglu_params(w1, w3, w2)
    y = jax.block_until_ready(mlp_swiglu(x, params))
    assert y.shape == (B, T, D)

    y_bf16 = mlp_swiglu_ref_bf16(x, w1, w3, w2)
    assert jnp.allclose(y, y_bf16, atol=1e-2, rtol=1e-2), "mismatch vs bf16 reference"
    y_f32 = mlp_swiglu_ref_f32(x, w1, w3, w2)
    assert jnp.allclose(y, y_f32, atol=1.5e-1, rtol=1e-1), "mismatch vs f32 reference"

    # Second config exercising hidden-axis streaming (n_h > 1), row padding,
    # and the in-output accumulation path.
    B2, T2, D2 = 3, 20, 128
    H2 = 4 * D2
    kx2, k4, k5, k6 = jax.random.split(jax.random.PRNGKey(0), 4)
    x2 = jax.random.normal(kx2, (B2, T2, D2), dtype=jnp.float32)
    w1b = jax.random.normal(k4, (D2, H2), dtype=jnp.float32) * (1.0 / D2**0.5)
    w3b = jax.random.normal(k6, (D2, H2), dtype=jnp.float32) * (1.0 / D2**0.5)
    w2b = jax.random.normal(k5, (H2, D2), dtype=jnp.float32) * (1.0 / H2**0.5)
    params2 = prepare_swiglu_params(w1b, w3b, w2b, force_th=128)   # force 4 hidden steps
    y2 = jax.block_until_ready(mlp_swiglu(x2, params2))
    y2_ref = mlp_swiglu_ref_bf16(x2, w1b, w3b, w2b)
    assert jnp.allclose(y2, y2_ref, atol=1e-2, rtol=1e-2), "mismatch (streamed) vs bf16 reference"

    print("KERNEL_OK")
</pallas_src>

<mosaic_0001>
module attributes {stable_mosaic.version = 11 : i64} {
  func.func @swiglu_kernel(%arg0: i32, %arg1: i32, %arg2: memref<16x32xf32, #tpu.memory_space<vmem>>, %arg3: memref<32x256xbf16, #tpu.memory_space<vmem>>, %arg4: memref<128x32xbf16, #tpu.memory_space<vmem>>, %arg5: memref<16x32xf32, #tpu.memory_space<vmem>>) attributes {dimension_semantics = [#tpu.dimension_semantics<parallel>, #tpu.dimension_semantics<arbitrary>], iteration_bounds = array<i64: 1, 1>, scalar_prefetch = 0 : i64, scratch_operands = 0 : i64, tpu.core_type = #tpu.core_type<tc>, window_params = [{transform_indices = @transform_0, window_bounds = array<i64: 16, 32>}, {transform_indices = @transform_1, window_bounds = array<i64: 32, 256>}, {transform_indices = @transform_2, window_bounds = array<i64: 128, 32>}, {transform_indices = @transform_3, window_bounds = array<i64: 16, 32>}]} {
    %c0 = arith.constant 0 : index
    %c0_0 = arith.constant 0 : index
    %0 = vector.load %arg2[%c0, %c0_0] : memref<16x32xf32, #tpu.memory_space<vmem>>, vector<16x32xf32>
    %1 = arith.truncf %0 : vector<16x32xf32> to vector<16x32xbf16>
    %c0_1 = arith.constant 0 : index
    %c0_2 = arith.constant 0 : index
    %2 = vector.load %arg3[%c0_1, %c0_2] : memref<32x256xbf16, #tpu.memory_space<vmem>>, vector<32x256xbf16>
    %cst = arith.constant dense<0.000000e+00> : vector<16x256xf32>
    %3 = tpu.matmul %1, %2, %cst {dimension_numbers = #tpu.dot_dimension_numbers<[1], [0], [0], [1], [0, 0, 1, 1], [], []>} : vector<16x32xbf16>, vector<32x256xbf16>, vector<16x256xf32> -> vector<16x256xf32>
    %4 = vector.extract_strided_slice %3 {offsets = [0, 0], sizes = [16, 128], strides = [1, 1]} : vector<16x256xf32> to vector<16x128xf32>
    %5 = vector.extract_strided_slice %3 {offsets = [0, 128], sizes = [16, 128], strides = [1, 1]} : vector<16x256xf32> to vector<16x128xf32>
    %6 = arith.negf %4 : vector<16x128xf32>
    %7 = math.exp %6 : vector<16x128xf32>
    %cst_3 = arith.constant 1.000000e+00 : f32
    %8 = vector.broadcast %cst_3 : f32 to vector<16x128xf32>
    %9 = arith.addf %8, %7 : vector<16x128xf32>
    %10 = arith.divf %8, %9 : vector<16x128xf32>
    %11 = arith.mulf %4, %10 : vector<16x128xf32>
    %12 = arith.mulf %11, %5 : vector<16x128xf32>
    %13 = arith.truncf %12 : vector<16x128xf32> to vector<16x128xbf16>
    %c0_4 = arith.constant 0 : index
    %c0_5 = arith.constant 0 : index
    %14 = vector.load %arg4[%c0_4, %c0_5] : memref<128x32xbf16, #tpu.memory_space<vmem>>, vector<128x32xbf16>
    %cst_6 = arith.constant dense<0.000000e+00> : vector<16x32xf32>
    %15 = tpu.matmul %13, %14, %cst_6 {dimension_numbers = #tpu.dot_dimension_numbers<[1], [0], [0], [1], [0, 0, 1, 1], [], []>} : vector<16x128xbf16>, vector<128x32xbf16>, vector<16x32xf32> -> vector<16x32xf32>
    %c0_i32 = arith.constant 0 : i32
    %16 = arith.cmpi eq, %arg1, %c0_i32 : i32
    %17 = arith.extui %16 : i1 to i32
    %c0_i32_7 = arith.constant 0 : i32
    %18 = arith.cmpi ne, %17, %c0_i32_7 : i32
    scf.if %18 {
      %c0_10 = arith.constant 0 : index
      %c0_11 = arith.constant 0 : index
      %22 = vector.load %arg5[%c0_10, %c0_11] : memref<16x32xf32, #tpu.memory_space<vmem>>, vector<16x32xf32>
      tpu.vector_store %arg5[%c0_10, %c0_11], %15 {strides = array<i32>} : memref<16x32xf32, #tpu.memory_space<vmem>>, vector<16x32xf32>,
    } else {
    }
    %c0_i32_8 = arith.constant 0 : i32
    %19 = arith.cmpi sgt, %arg1, %c0_i32_8 : i32
    %20 = arith.extui %19 : i1 to i32
    %c0_i32_9 = arith.constant 0 : i32
    %21 = arith.cmpi ne, %20, %c0_i32_9 : i32
    scf.if %21 {
      %c0_10 = arith.constant 0 : index
      %c0_11 = arith.constant 0 : index
      %22 = vector.load %arg5[%c0_10, %c0_11] : memref<16x32xf32, #tpu.memory_space<vmem>>, vector<16x32xf32>
      %23 = arith.addf %22, %15 : vector<16x32xf32>
      %c0_12 = arith.constant 0 : index
      %c0_13 = arith.constant 0 : index
      %24 = vector.load %arg5[%c0_12, %c0_13] : memref<16x32xf32, #tpu.memory_space<vmem>>, vector<16x32xf32>
      tpu.vector_store %arg5[%c0_12, %c0_13], %23 {strides = array<i32>} : memref<16x32xf32, #tpu.memory_space<vmem>>, vector<16x32xf32>,
    } else {
    }
    return
  }
  func.func @transform_0(%arg0: i32, %arg1: i32) -> (i32, i32) {
    %c0_i32 = arith.constant 0 : i32
    %c0_i32_0 = arith.constant 0 : i32
    return %arg0, %c0_i32 : i32, i32
  }
  func.func @transform_1(%arg0: i32, %arg1: i32) -> (i32, i32) {
    %c0_i32 = arith.constant 0 : i32
    %c0_i32_0 = arith.constant 0 : i32
    return %c0_i32, %arg1 : i32, i32
  }
  func.func @transform_2(%arg0: i32, %arg1: i32) -> (i32, i32) {
    %c0_i32 = arith.constant 0 : i32
    %c0_i32_0 = arith.constant 0 : i32
    return %arg1, %c0_i32 : i32, i32
  }
  func.func @transform_3(%arg0: i32, %arg1: i32) -> (i32, i32) {
    %c0_i32 = arith.constant 0 : i32
    %c0_i32_0 = arith.constant 0 : i32
    return %arg0, %c0_i32 : i32, i32
  }
}

</mosaic_0001>

<bundles_post_ra>
// kernel: tpu_custom_call.1
= control target key start
LH: loop header
LB: loop body
LE: loop exit
PB: predicated region body
PF: predicated region fallthrough
CT: control target
= control target key end

     0   :  { %v340_v2 = vmov 0   ;;  %vm43_vm0 = vcmask 261120   ;;  %s423_s0 = inlined_call_operand.vmem [shape: f32[16,32], index: 0, kind: input, shape index: {}]   ;;  %s424_s1 = inlined_call_operand.vmem [shape: bf16[32,256], index: 1, kind: input, shape index: {}]   ;;  %s425_s2 = inlined_call_operand.vmem [shape: bf16[128,32], index: 2, kind: input, shape index: {}]   ;;  %s426_s3 = inlined_call_operand.hbm [shape: f32[16,32], index: 3, kind: output, shape index: {}]  }
   0x1   :  { %v294_v0 = vld [vmem:[%s424_s1 + $0x4] ss:$8 sps:$4 sm:$0xff]   ;;  %v296_v1 = vld [vmem:[%s424_s1] ss:$8 sps:$4 sm:$0xff]   ;;  %79 = vmatprep.mubr.bf16.mxu0 %v340_v2  ;;  %v297_v3 = vld [vmem:[%s424_s1 + $0x14] ss:$8 sps:$4 sm:$0xff]  }
   0x2   :  { %47 = vmatprep.subr.bf16.mxu0 %v294_v0  ;;  %v299_v4 = vld [vmem:[%s424_s1 + $0x10] ss:$8 sps:$4 sm:$0xff]   ;;  %v16_v5 = vld [vmem:[%s423_s0] sm:$0xff]  ;;  %v17_v6 = vld [vmem:[%s423_s0 + $0x8] sm:$0xff] }
   0x3   :  { %48 = vmatpush1.bf16.msra.mxu0 %v296_v1  ;;  %v18_v7 = vpack.c.bf16 %v17_v6, %v16_v5 }
   0x4   :  { %49 = vmatprep.subr.bf16.mxu0 %v297_v3 }
   0x7   :  { %50 = vmatpush1.bf16.msra.mxu0 %v299_v4 }
   0x8   :  { %8 = vsyncpa [#allocation3], 0  ;;  %v300_v8 = vld [vmem:[%s425_s2] sm:$0xff]   ;;  %v341_v9 = vmov 0.0   ;;  %v301_v10 = vld [vmem:[%s425_s2 + $0x8] sm:$0xff]   ;;  %vm342_vm1 = vmmov 0  }
   0x9   :  { %268 = vmatprep.subr.bf16.mxu1 %v341_v9  ;;  %v302_v11 = vld [vmem:[%s425_s2 + $0x10] sm:$0xff]   ;;  %v303_v12 = vld [vmem:[%s425_s2 + $0x18] sm:$0xff]   ;;  %v304_v13 = vld [vmem:[%s425_s2 + $0x20] sm:$0xff]   ;;  %284 = vmatprep.mubr.msk.bf16.mxu1 %vm342_vm1, %v341_v9 }
   0xa   :  { %248 = vmatmul.mubr.msk.bf16.vlgmr.msra.gmra.mrb[0].mxu0 %vm43_vm0, %v18_v7  ;;  %269 = vmatpush3.bf16.msra.mxu1 %v300_v8  ;;  %v305_v14 = vld [vmem:[%s425_s2 + $0x28] sm:$0xff]   ;;  %v306_v15 = vld [vmem:[%s425_s2 + $0x30] sm:$0xff]   ;;  %v307_v16 = vld [vmem:[%s425_s2 + $0x38] sm:$0xff]   ;;  %s343_s2 = smov [#allocation2]  }
   0xb   :  { %270 = vmatprep.subr.bf16.mxu1 %v341_v9  ;;  %s233_s11 = sshll.u32 %s343_s2, 4  ;;  %s234_s11 = int_to_ptr.vmem [resolvable:$true] %s233_s11 }
   0xc   :  { %s316_s12 = scalar_lea.vmem %s234_s11, 256  ;;  %p321_p1 = scmp.lt.s32.totalorder %s234_s11, %s234_s11 }
   0xd   :  { %p317_p0 = scmp.ne.s32.totalorder %s234_s11, %s316_s12  ;;  %p322_p2 = scmp.lt.s32.totalorder %s316_s12, %s316_s12 }
   0xe   :  { %271 = vmatpush3.bf16.msra.mxu1 %v301_v10 }
   0xf   :  { %272 = vmatprep.subr.bf16.mxu1 %v341_v9  ;;  %p323_p3 = por %p322_p2, %p321_p1 }
  0x11   :  { %p324_p4 = pnand %p323_p3, %p317_p0 }
  0x12   :  { %273 = vmatpush3.bf16.msra.mxu1 %v302_v11 }
  0x13   :  { %274 = vmatprep.subr.bf16.mxu1 %v341_v9 }
  0x16   :  { %275 = vmatpush3.bf16.msra.mxu1 %v303_v12 }
  0x17   :  { %276 = vmatprep.subr.bf16.mxu1 %v341_v9 }
  0x1a   :  { %277 = vmatpush3.bf16.msra.mxu1 %v304_v13 }
  0x1b   :  { %278 = vmatprep.subr.bf16.mxu1 %v341_v9 }
  0x1e   :  { %279 = vmatpush3.bf16.msra.mxu1 %v305_v14 }
  0x1f   :  { %280 = vmatprep.subr.bf16.mxu1 %v341_v9 }
  0x22   :  { %281 = vmatpush3.bf16.msra.mxu1 %v306_v15 }
  0x23   :  { %282 = vmatprep.subr.bf16.mxu1 %v341_v9 }
  0x26   :  { %283 = vmatpush3.bf16.msra.mxu1 %v307_v16 }
  0xdd   :  { %v81_v17 = vpop.f32.mrb[0].mxu0 }
  0xde   :  { %v249_v18 = vmul.f32 -1.442695, %v81_v17  ;;  %v83_v19 = vpop.f32.mrb[1].mxu0 }
  0xdf   :  { %v85_v20 = vpop.f32.mrb[2].mxu0 }
  0xe0   :  { %308 = vpow2.f32 %v249_v18  ;;  %v250_v21 = vmul.f32 -1.442695, %v85_v20  ;;  %v87_v22 = vpop.f32.mrb[3].mxu0 }
  0xe2   :  { %310 = vpow2.f32 %v250_v21 }
  0xea   :  { %v309_v23 = vpop.eup %308 }
  0xeb   :  { %v96_v24 = vadd.f32 1.0, %v309_v23 }
  0xec   :  { %v311_v25 = vpop.eup %310 }
  0xed   :  { %312 = vrcp.f32 %v96_v24  ;;  %v97_v26 = vadd.f32 1.0, %v311_v25 }
  0xef   :  { %314 = vrcp.f32 %v97_v26 }
  0xf7   :  { %v313_v27 = vpop.eup %312 }
  0xf8   :  { %v102_v28 = vmul.f32 %v313_v27, %v81_v17 }
  0xf9   :  { %v315_v29 = vpop.eup %314 }
  0xfa   :  { %v104_v30 = vmul.f32 %v102_v28, %v83_v19  ;;  %v103_v31 = vmul.f32 %v315_v29, %v85_v20 }
  0xfc   :  { %v105_v32 = vmul.f32 %v103_v31, %v87_v22 }
  0xfe   :  { %v106_v33 = vpack.c.bf16 %v105_v32, %v104_v30 }
 0x100   :  { %285 = vmatmul.mubr.bf16.vlgmr.msra.gmra.mrb[0].mxu1 %v106_v33 }
 0x1d3   :  { %v205_v34 = vpop.f32.mrb[0].mxu1 }
 0x1d4   :  { %216 = vst.msk [vmem:[#allocation2] sm:$0xff] %vm43_vm0, %v205_v34  ;;  %v286_v35 = vpop.f32.mrb[1].mxu1 }
 0x1d5   :  { %v208_v36 = vpop.f32.mrb[2].mxu1 }
 0x1d6   :  { %217 = vst.msk [vmem:[#allocation2 + $0x8] sm:$0xff] %vm43_vm0, %v208_v36  ;;  %v287_v37 = vpop.f32.mrb[3].mxu1 }
 0x1d7   :  { %327 = shalt.err (!%p324_p4)
}
 0x1d8   :  { %s328_s15 = scalar_lea.hbm %s426_s3, 256 }
 0x1d9   :  { %p329_p5 = scmp.ne.s32.totalorder %s426_s3, %s328_s15  ;;  %p332_p6 = scmp.lt.u32.totalorder %s328_s15, %s426_s3 }
 0x1db   :  { %p334_p7 = pnand %p332_p6, %p329_p5 }
 0x1dd   :  { %337 = shalt.err (!%p334_p7)
}
 0x1de   :  { %s344_s20 = smov 128   ;;  %s345_s21 = smov 8  }
 0x1df   :  { %239 = dma.vmem_to_hbm [thread:$0]  %s234_s11, 256, %s426_s3, [#allocation3], %s344_s20, %s344_s20, %s345_s21  }
 0x1e0   :  { %338 = dma.done.wait [#allocation3], 256  }
 0x1e1   :  { %339 = vsyncadd [#allocation3], 4294967040 }
 0x1e2   :  { %243 = vsyncpa [#allocation3], 1 }

</bundles_post_ra>
